<compile_context>
chip_gen: v5e
topology: v5e:2x2
jax: 0.10.0
libtpu: 0.0.40
codegen_flags: <defaults>
</compile_context>

<pallas_src>
import functools

import jax
import jax.numpy as jnp
from jax.experimental import pallas as pl
from jax.experimental.pallas import tpu as pltpu

LANE = 128
SUBLANE = 8


def _round_up(n, m):
    return ((n + m - 1) // m) * m


def dqn_kernel(x_ref,
               w1_ref, b1_ref,
               w2_ref, b2_ref,
               w3_ref, b3_ref,
               w4_ref, b4_ref,
               o_ref):
    h = x_ref[...]                                            # (TB, F) f32/bf16
    for w_ref, b_ref in ((w1_ref, b1_ref), (w2_ref, b2_ref),
                         (w3_ref, b3_ref), (w4_ref, b4_ref)):
        acc = jnp.dot(h.astype(w_ref.dtype), w_ref[...],
                      preferred_element_type=jnp.float32)     # MXU, f32 accum
        h = jnp.maximum(acc + b_ref[...], 0.0)                # f32 VPU epilogue
    o_ref[...] = h.astype(o_ref.dtype)                        # (TB, output_size)


def init_dqn_params(key, input_size, n_hidden1, n_hidden2, n_hidden3,
                    output_size):
    """Mirrors the PyTorch module: W ~ N(0, 0.1); b ~ U(+-1/sqrt(fan_in)).
    Weights stored pre-transposed as (in, out)."""
    sizes = [(input_size, n_hidden1), (n_hidden1, n_hidden2),
             (n_hidden2, n_hidden3), (n_hidden3, output_size)]
    params = []
    for fan_in, fan_out in sizes:
        key, kw, kb = jax.random.split(key, 3)
        w = 0.1 * jax.random.normal(kw, (fan_in, fan_out), dtype=jnp.float32)
        bound = 1.0 / jnp.sqrt(jnp.float32(fan_in))
        b = jax.random.uniform(kb, (1, fan_out), dtype=jnp.float32,
                               minval=-bound, maxval=bound)
        params.append((w, b))
    return params


def prepare_dqn_params(params, weight_dtype=jnp.bfloat16):
    """Zero-pad only the *hidden* feature dims to 128 lanes and cast weights to
    `weight_dtype`.  First-layer fan-in and last-layer fan-out stay unpadded so
    the kernel's HBM-facing activations (input and output) carry no padding.
    Biases stay f32 (VPU epilogue).  Done once, offline."""
    n = len(params)
    prepared = []
    for idx, (w, b) in enumerate(params):
        fi, fo = w.shape
        fi_p = fi if idx == 0 else _round_up(fi, LANE)
        fo_p = fo if idx == n - 1 else _round_up(fo, LANE)
        w_p = jnp.zeros((fi_p, fo_p), weight_dtype)
        w_p = w_p.at[:fi, :fo].set(w.astype(weight_dtype))
        b_p = jnp.zeros((1, fo_p), jnp.float32).at[:, :fo].set(b)
        prepared.append((w_p, b_p))
    return prepared


@functools.partial(jax.jit, static_argnames=("output_size", "block_b"))
def dqn_forward(x, prepared_params, output_size, block_b=1024):
    """x: (B, input_size) f32 or bf16 (bf16 halves input DMA bytes for free).
    prepared_params: output of prepare_dqn_params."""
    (w1, b1), (w2, b2), (w3, b3), (w4, b4) = prepared_params
    B, F = x.shape
    assert w1.shape[0] == F, "input feature dim must match fc_1 fan-in"
    out_dim = w4.shape[1]
    assert out_dim == output_size

    # Batch tiling: 8-row aligned; tile chosen so the grid divides the padded
    # batch (at most num_tiles*8 pad rows -- never near-doubles the work).
    b8 = _round_up(B, SUBLANE)
    num_tiles = pl.cdiv(b8, block_b)
    if num_tiles == 1 and b8 >= 512:
        # v7x: give the "parallel" batch axis >= 2 steps so both TensorCores
        # get work when there is enough of it.
        num_tiles = 2
    tb = _round_up(pl.cdiv(b8, num_tiles), SUBLANE)
    b_pad = num_tiles * tb
    # NOTE: at tb<=2048 the double-buffered x/out blocks plus resident weights
    # are well under 1 MiB of VMEM; only set vmem_limit_bytes if tb is pushed
    # past ~4096 rows (v7x scoped default is 32 MiB of 64 MiB physical).

    if b_pad == B:
        x_p = x                              # no wrapper-side pad pass at all
    else:
        x_p = jnp.zeros((b_pad, F), x.dtype).at[:B, :].set(x)

    tile_map = lambda i: (i, 0)     # activations: walk the batch
    resident = lambda i: (0, 0)     # weights/biases: same block every step

    out = pl.pallas_call(
        dqn_kernel,
        out_shape=jax.ShapeDtypeStruct((b_pad, out_dim), jnp.float32),
        grid=(num_tiles,),
        in_specs=[
            pl.BlockSpec((tb, F), tile_map),
            pl.BlockSpec(w1.shape, resident), pl.BlockSpec(b1.shape, resident),
            pl.BlockSpec(w2.shape, resident), pl.BlockSpec(b2.shape, resident),
            pl.BlockSpec(w3.shape, resident), pl.BlockSpec(b3.shape, resident),
            pl.BlockSpec(w4.shape, resident), pl.BlockSpec(b4.shape, resident),
        ],
        out_specs=pl.BlockSpec((tb, out_dim), tile_map),
        compiler_params=pltpu.CompilerParams(
            dimension_semantics=("parallel",)),
    )(x_p, w1, b1, w2, b2, w3, b3, w4, b4)

    return out if b_pad == B else out[:B]


if __name__ == "__main__":
    key = jax.random.PRNGKey(0)

    # small shapes consistent with the module
    batch = 8
    input_size, n_hidden1, n_hidden2, n_hidden3, output_size = 32, 64, 64, 32, 16

    key, kx = jax.random.split(key)
    x = jax.random.normal(kx, (batch, input_size), dtype=jnp.float32)

    params = init_dqn_params(key, input_size, n_hidden1, n_hidden2,
                             n_hidden3, output_size)
    prepared = prepare_dqn_params(params, weight_dtype=jnp.bfloat16)

    # Reference 1: identical math in plain JAX (padded hidden dims, bf16
    # weights, f32 accumulation).
    def matched_ref(xx, prepped, out_size):
        h = xx
        for w, b in prepped:
            h = jnp.maximum(
                jnp.dot(h.astype(w.dtype), w,
                        preferred_element_type=jnp.float32) + b, 0.0)
        return h[:, :out_size]

    # Reference 2: original full-f32 module semantics (loose tol: bf16 weights).
    def f32_ref(xx):
        h = xx
        for w, b in params:
            h = jnp.maximum(h @ w + b, 0.0)
        return h

    # Case A: tile-aligned batch (no wrapper pad, no wrapper slice).
    out = dqn_forward(x, prepared, output_size=output_size)
    out = jax.block_until_ready(out)
    assert out.shape == (batch, output_size)
    assert jnp.allclose(out, matched_ref(x, prepared, output_size),
                        atol=1e-3, rtol=1e-3)
    assert jnp.allclose(out, f32_ref(x), atol=5e-2, rtol=5e-2)

    # Case B: non-aligned batch exercises the batch-pad/slice path.
    x2 = jax.random.normal(jax.random.PRNGKey(1), (batch + 3, input_size),
                           dtype=jnp.float32)
    out2 = jax.block_until_ready(
        dqn_forward(x2, prepared, output_size=output_size))
    assert out2.shape == (batch + 3, output_size)
    assert jnp.allclose(out2, matched_ref(x2, prepared, output_size),
                        atol=1e-3, rtol=1e-3)

    # NOTE: final-layer ReLU is kept intentionally — it matches the given
    # PyTorch forward (F.relu on fc_4), even though it clamps Q-values >= 0.
    print("KERNEL_OK")
</pallas_src>

<mosaic_0001>
module attributes {stable_mosaic.version = 11 : i64} {
  func.func @dqn_kernel(%arg0: i32, %arg1: memref<8x32xf32, #tpu.memory_space<vmem>>, %arg2: memref<32x128xbf16, #tpu.memory_space<vmem>>, %arg3: memref<1x128xf32, #tpu.memory_space<vmem>>, %arg4: memref<128x128xbf16, #tpu.memory_space<vmem>>, %arg5: memref<1x128xf32, #tpu.memory_space<vmem>>, %arg6: memref<128x128xbf16, #tpu.memory_space<vmem>>, %arg7: memref<1x128xf32, #tpu.memory_space<vmem>>, %arg8: memref<128x16xbf16, #tpu.memory_space<vmem>>, %arg9: memref<1x16xf32, #tpu.memory_space<vmem>>, %arg10: memref<8x16xf32, #tpu.memory_space<vmem>>) attributes {dimension_semantics = [#tpu.dimension_semantics<parallel>], iteration_bounds = array<i64: 1>, scalar_prefetch = 0 : i64, scratch_operands = 0 : i64, tpu.core_type = #tpu.core_type<tc>, window_params = [{transform_indices = @transform_0, window_bounds = array<i64: 8, 32>}, {pipeline_mode = #tpu.pipeline_mode<synchronous>, transform_indices = @transform_1, window_bounds = array<i64: 32, 128>}, {pipeline_mode = #tpu.pipeline_mode<synchronous>, transform_indices = @transform_2, window_bounds = array<i64: 1, 128>}, {pipeline_mode = #tpu.pipeline_mode<synchronous>, transform_indices = @transform_3, window_bounds = array<i64: 128, 128>}, {pipeline_mode = #tpu.pipeline_mode<synchronous>, transform_indices = @transform_4, window_bounds = array<i64: 1, 128>}, {pipeline_mode = #tpu.pipeline_mode<synchronous>, transform_indices = @transform_5, window_bounds = array<i64: 128, 128>}, {pipeline_mode = #tpu.pipeline_mode<synchronous>, transform_indices = @transform_6, window_bounds = array<i64: 1, 128>}, {pipeline_mode = #tpu.pipeline_mode<synchronous>, transform_indices = @transform_7, window_bounds = array<i64: 128, 16>}, {pipeline_mode = #tpu.pipeline_mode<synchronous>, transform_indices = @transform_8, window_bounds = array<i64: 1, 16>}, {transform_indices = @transform_9, window_bounds = array<i64: 8, 16>}]} {
    %c0 = arith.constant 0 : index
    %c0_0 = arith.constant 0 : index
    %0 = vector.load %arg1[%c0, %c0_0] : memref<8x32xf32, #tpu.memory_space<vmem>>, vector<8x32xf32>
    %1 = arith.truncf %0 : vector<8x32xf32> to vector<8x32xbf16>
    %c0_1 = arith.constant 0 : index
    %c0_2 = arith.constant 0 : index
    %2 = vector.load %arg2[%c0_1, %c0_2] : memref<32x128xbf16, #tpu.memory_space<vmem>>, vector<32x128xbf16>
    %cst = arith.constant dense<0.000000e+00> : vector<8x128xf32>
    %3 = tpu.matmul %1, %2, %cst {dimension_numbers = #tpu.dot_dimension_numbers<[1], [0], [0], [1], [0, 0, 1, 1], [], []>} : vector<8x32xbf16>, vector<32x128xbf16>, vector<8x128xf32> -> vector<8x128xf32>
    %c0_3 = arith.constant 0 : index
    %c0_4 = arith.constant 0 : index
    %4 = vector.load %arg3[%c0_3, %c0_4] : memref<1x128xf32, #tpu.memory_space<vmem>>, vector<1x128xf32>
    %5 = vector.broadcast %4 : vector<1x128xf32> to vector<8x128xf32>
    %6 = arith.addf %3, %5 : vector<8x128xf32>
    %cst_5 = arith.constant 0.000000e+00 : f32
    %7 = vector.broadcast %cst_5 : f32 to vector<8x128xf32>
    %8 = arith.maximumf %6, %7 : vector<8x128xf32>
    %9 = arith.truncf %8 : vector<8x128xf32> to vector<8x128xbf16>
    %c0_6 = arith.constant 0 : index
    %c0_7 = arith.constant 0 : index
    %10 = vector.load %arg4[%c0_6, %c0_7] : memref<128x128xbf16, #tpu.memory_space<vmem>>, vector<128x128xbf16>
    %cst_8 = arith.constant dense<0.000000e+00> : vector<8x128xf32>
    %11 = tpu.matmul %9, %10, %cst_8 {dimension_numbers = #tpu.dot_dimension_numbers<[1], [0], [0], [1], [0, 0, 1, 1], [], []>} : vector<8x128xbf16>, vector<128x128xbf16>, vector<8x128xf32> -> vector<8x128xf32>
    %c0_9 = arith.constant 0 : index
    %c0_10 = arith.constant 0 : index
    %12 = vector.load %arg5[%c0_9, %c0_10] : memref<1x128xf32, #tpu.memory_space<vmem>>, vector<1x128xf32>
    %13 = vector.broadcast %12 : vector<1x128xf32> to vector<8x128xf32>
    %14 = arith.addf %11, %13 : vector<8x128xf32>
    %cst_11 = arith.constant 0.000000e+00 : f32
    %15 = vector.broadcast %cst_11 : f32 to vector<8x128xf32>
    %16 = arith.maximumf %14, %15 : vector<8x128xf32>
    %17 = arith.truncf %16 : vector<8x128xf32> to vector<8x128xbf16>
    %c0_12 = arith.constant 0 : index
    %c0_13 = arith.constant 0 : index
    %18 = vector.load %arg6[%c0_12, %c0_13] : memref<128x128xbf16, #tpu.memory_space<vmem>>, vector<128x128xbf16>
    %cst_14 = arith.constant dense<0.000000e+00> : vector<8x128xf32>
    %19 = tpu.matmul %17, %18, %cst_14 {dimension_numbers = #tpu.dot_dimension_numbers<[1], [0], [0], [1], [0, 0, 1, 1], [], []>} : vector<8x128xbf16>, vector<128x128xbf16>, vector<8x128xf32> -> vector<8x128xf32>
    %c0_15 = arith.constant 0 : index
    %c0_16 = arith.constant 0 : index
    %20 = vector.load %arg7[%c0_15, %c0_16] : memref<1x128xf32, #tpu.memory_space<vmem>>, vector<1x128xf32>
    %21 = vector.broadcast %20 : vector<1x128xf32> to vector<8x128xf32>
    %22 = arith.addf %19, %21 : vector<8x128xf32>
    %cst_17 = arith.constant 0.000000e+00 : f32
    %23 = vector.broadcast %cst_17 : f32 to vector<8x128xf32>
    %24 = arith.maximumf %22, %23 : vector<8x128xf32>
    %25 = arith.truncf %24 : vector<8x128xf32> to vector<8x128xbf16>
    %c0_18 = arith.constant 0 : index
    %c0_19 = arith.constant 0 : index
    %26 = vector.load %arg8[%c0_18, %c0_19] : memref<128x16xbf16, #tpu.memory_space<vmem>>, vector<128x16xbf16>
    %cst_20 = arith.constant dense<0.000000e+00> : vector<8x16xf32>
    %27 = tpu.matmul %25, %26, %cst_20 {dimension_numbers = #tpu.dot_dimension_numbers<[1], [0], [0], [1], [0, 0, 1, 1], [], []>} : vector<8x128xbf16>, vector<128x16xbf16>, vector<8x16xf32> -> vector<8x16xf32>
    %c0_21 = arith.constant 0 : index
    %c0_22 = arith.constant 0 : index
    %28 = vector.load %arg9[%c0_21, %c0_22] : memref<1x16xf32, #tpu.memory_space<vmem>>, vector<1x16xf32>
    %29 = vector.broadcast %28 : vector<1x16xf32> to vector<8x16xf32>
    %30 = arith.addf %27, %29 : vector<8x16xf32>
    %cst_23 = arith.constant 0.000000e+00 : f32
    %31 = vector.broadcast %cst_23 : f32 to vector<8x16xf32>
    %32 = arith.maximumf %30, %31 : vector<8x16xf32>
    %c0_24 = arith.constant 0 : index
    %c0_25 = arith.constant 0 : index
    %33 = vector.load %arg10[%c0_24, %c0_25] : memref<8x16xf32, #tpu.memory_space<vmem>>, vector<8x16xf32>
    tpu.vector_store %arg10[%c0_24, %c0_25], %32 {strides = array<i32>} : memref<8x16xf32, #tpu.memory_space<vmem>>, vector<8x16xf32>,
    return
  }
  func.func @transform_0(%arg0: i32) -> (i32, i32) {
    %c0_i32 = arith.constant 0 : i32
    %c0_i32_0 = arith.constant 0 : i32
    return %arg0, %c0_i32 : i32, i32
  }
  func.func @transform_1(%arg0: i32) -> (i32, i32) {
    %c0_i32 = arith.constant 0 : i32
    %c0_i32_0 = arith.constant 0 : i32
    %c0_i32_1 = arith.constant 0 : i32
    return %c0_i32, %c0_i32_0 : i32, i32
  }
  func.func @transform_2(%arg0: i32) -> (i32, i32) {
    %c0_i32 = arith.constant 0 : i32
    %c0_i32_0 = arith.constant 0 : i32
    %c0_i32_1 = arith.constant 0 : i32
    return %c0_i32, %c0_i32_0 : i32, i32
  }
  func.func @transform_3(%arg0: i32) -> (i32, i32) {
    %c0_i32 = arith.constant 0 : i32
    %c0_i32_0 = arith.constant 0 : i32
    %c0_i32_1 = arith.constant 0 : i32
    return %c0_i32, %c0_i32_0 : i32, i32
  }
  func.func @transform_4(%arg0: i32) -> (i32, i32) {
    %c0_i32 = arith.constant 0 : i32
    %c0_i32_0 = arith.constant 0 : i32
    %c0_i32_1 = arith.constant 0 : i32
    return %c0_i32, %c0_i32_0 : i32, i32
  }
  func.func @transform_5(%arg0: i32) -> (i32, i32) {
    %c0_i32 = arith.constant 0 : i32
    %c0_i32_0 = arith.constant 0 : i32
    %c0_i32_1 = arith.constant 0 : i32
    return %c0_i32, %c0_i32_0 : i32, i32
  }
  func.func @transform_6(%arg0: i32) -> (i32, i32) {
    %c0_i32 = arith.constant 0 : i32
    %c0_i32_0 = arith.constant 0 : i32
    %c0_i32_1 = arith.constant 0 : i32
    return %c0_i32, %c0_i32_0 : i32, i32
  }
  func.func @transform_7(%arg0: i32) -> (i32, i32) {
    %c0_i32 = arith.constant 0 : i32
    %c0_i32_0 = arith.constant 0 : i32
    %c0_i32_1 = arith.constant 0 : i32
    return %c0_i32, %c0_i32_0 : i32, i32
  }
  func.func @transform_8(%arg0: i32) -> (i32, i32) {
    %c0_i32 = arith.constant 0 : i32
    %c0_i32_0 = arith.constant 0 : i32
    %c0_i32_1 = arith.constant 0 : i32
    return %c0_i32, %c0_i32_0 : i32, i32
  }
  func.func @transform_9(%arg0: i32) -> (i32, i32) {
    %c0_i32 = arith.constant 0 : i32
    %c0_i32_0 = arith.constant 0 : i32
    return %arg0, %c0_i32 : i32, i32
  }
}

</mosaic_0001>

<bundles_post_ra>
// kernel: dqn_forward.1
= control target key start
LH: loop header
LB: loop body
LE: loop exit
PB: predicated region body
PF: predicated region fallthrough
CT: control target
= control target key end

     0   :  { %14 = vsyncpa [#allocation3], 0  ;;  %s720_s0 = inlined_call_operand.vmem [shape: f32[8,32], index: 0, kind: input, shape index: {}]   ;;  %s721_s1 = inlined_call_operand.hbm [shape: bf16[32,128], index: 1, kind: input, shape index: {}]   ;;  %s722_s2 = inlined_call_operand.vmem [shape: f32[1,128], index: 2, kind: input, shape index: {}]   ;;  %s723_s3 = inlined_call_operand.vmem [shape: bf16[128,128], index: 3, kind: input, shape index: {}]   ;;  %s724_s4 = inlined_call_operand.vmem [shape: f32[1,128], index: 4, kind: input, shape index: {}]   ;;  %s725_s5 = inlined_call_operand.hbm [shape: bf16[128,128], index: 5, kind: input, shape index: {}]   ;;  %s726_s6 = inlined_call_operand.vmem [shape: f32[1,128], index: 6, kind: input, shape index: {}]   ;;  %s727_s7 = inlined_call_operand.vmem [shape: bf16[128,16], index: 7, kind: input, shape index: {}]   ;;  %s728_s8 = inlined_call_operand.vmem [shape: f32[1,16], index: 8, kind: input, shape index: {}]   ;;  %s729_s9 = inlined_call_operand.hbm [shape: f32[8,16], index: 9, kind: output, shape index: {}]  }
   0x1   :  { %15 = vsyncpa [#allocation6], 0 }
   0x2   :  { %16 = vsyncpa [#allocation4], 0  ;;  %s23_s11 = sshll.u32 %s721_s1, 4  ;;  %s593_s12 = smov [#allocation2]   ;;  %s24_s11 = int_to_ptr.hbm [resolvable:$true] %s23_s11 }
   0x3   :  { %s25_s13 = sshll.u32 %s593_s12, 4  ;;  %s42_s16 = sshll.u32 %s725_s5, 4  ;;  %s26_s13 = int_to_ptr.vmem [resolvable:$true] %s25_s13  ;;  %s43_s16 = int_to_ptr.hbm [resolvable:$true] %s42_s16 }
   0x4   :  { %s594_s17 = smov 64   ;;  %s595_s18 = smov 4  }
   0x5   :  { %31 = dma.hbm_to_vmem [thread:$0]  %s24_s11, 256, %s26_s13, [#allocation3], %s594_s17, %s594_s17, %s595_s18  }
   0x6   :  { %s596_s19 = smov [#allocation5]  }
   0x7   :  { %s44_s20 = sshll.u32 %s596_s19, 4  ;;  %s45_s20 = int_to_ptr.vmem [resolvable:$true] %s44_s20 }
   0x8   :  { %50 = dma.hbm_to_vmem [thread:$0]  %s43_s16, 1024, %s45_s20, [#allocation6], %s594_s17, %s594_s17, %s595_s18  }
   0x9   :  { %587 = dma.done.wait [#allocation3], 256  }
   0xa   :  { %588 = vsyncadd [#allocation3], 4294967040 }
   0xb   :  { %589 = dma.done.wait [#allocation6], 1024  }
   0xc   :  { %590 = vsyncadd [#allocation6], 4294966272  ;;  %v481_v0 = vld [vmem:[#allocation2 + $0x8] sm:$0xff]  ;;  %v489_v1 = vld [vmem:[%s723_s3 + $0x38] sm:$0xff]  ;;  %vm88_vm0 = vcmask 261120   ;;  %s597_s12 = smov [#allocation7]  }
   0xd   :  { %98 = vmatpush.bf16.msra.mxu0 %v481_v0  ;;  %v480_v2 = vld [vmem:[#allocation2] sm:$0xff]  ;;  %175 = vmatpush.bf16.msra.mxu1 %v489_v1  ;;  %v488_v4 = vld [vmem:[%s723_s3 + $0x30] sm:$0xff]  ;;  %v487_v6 = vld [vmem:[%s723_s3 + $0x28] sm:$0xff]  ;;  %s362_s13 = sshll.u32 %s597_s12, 4  ;;  %s364_s15 = sshll.u32 %s729_s9, 4  ;;  %vm355_vm1 = vcmask 130048   ;;  %s363_s13 = int_to_ptr.vmem [resolvable:$true] %s362_s13  ;;  %s365_s15 = int_to_ptr.hbm [resolvable:$true] %s364_s15 }
   0xe   :  { %v66_v3 = vld [vmem:[%s720_s0] sm:$0xff]  ;;  %v485_v8 = vld [vmem:[%s723_s3 + $0x18] sm:$0xff]  ;;  %v484_v9 = vld [vmem:[%s723_s3 + $0x10] sm:$0xff] }
   0xf   :  { %v67_v5 = vpack.c.bf16 %v66_v3, %v66_v3  ;;  %v486_v7 = vld [vmem:[%s723_s3 + $0x20] sm:$0xff]  ;;  %v483_v10 = vld [vmem:[%s723_s3 + $0x8] sm:$0xff]  ;;  %v495_v14 = vld [vmem:[#allocation5 + $0x28] sm:$0xff] }
  0x10   :  { %v482_v11 = vld [vmem:[%s723_s3] sm:$0xff]  ;;  %v497_v12 = vld [vmem:[#allocation5 + $0x38] sm:$0xff]  ;;  %v494_v15 = vld [vmem:[#allocation5 + $0x20] sm:$0xff] }
  0x11   :  { %99 = vmatpush.bf16.msra.mxu0 %v480_v2  ;;  %176 = vmatpush.bf16.msra.mxu1 %v488_v4  ;;  %v496_v13 = vld [vmem:[#allocation5 + $0x30] sm:$0xff]  ;;  %v493_v16 = vld [vmem:[#allocation5 + $0x18] sm:$0xff]  ;;  %v491_v24 = vld [vmem:[#allocation5 + $0x8] sm:$0xff] }
  0x12   :  { %258 = vmatpush.bf16.msra.mxu2 %v497_v12  ;;  %v492_v17 = vld [vmem:[#allocation5 + $0x10] sm:$0xff]  ;;  %v490_v25 = vld [vmem:[#allocation5] sm:$0xff]  ;;  %v505_v26 = vld [vmem:[%s727_s7 + $0x38] sm:$0xff] }
  0x13   :  { %v511_v18 = vld [vmem:[%s722_s2] ss:$0 sm:$0xff]  ;;  %341 = vmatpush.bf16.msra.mxu3 %v505_v26  ;;  %v504_v27 = vld [vmem:[%s727_s7 + $0x30] sm:$0xff]  ;;  %v503_v28 = vld [vmem:[%s727_s7 + $0x28] sm:$0xff] }
  0x14   :  { %383 = vmatmul.msk.bf16.vlgmr.msra.gmra.mxu0 %vm88_vm0, %v67_v5  ;;  %v502_v29 = vld [vmem:[%s727_s7 + $0x20] sm:$0xff]  ;;  %v501_v30 = vld [vmem:[%s727_s7 + $0x18] sm:$0xff]  ;;  %v500_v31 = vld [vmem:[%s727_s7 + $0x10] sm:$0xff] }
  0x15   :  { %177 = vmatpush.bf16.msra.mxu1 %v487_v6  ;;  %v512_v32 = vld [vmem:[%s724_s4] ss:$0 sm:$0xff]  ;;  %v499_v38 = vld [vmem:[%s727_s7 + $0x8] sm:$0xff] }
  0x16   :  { %259 = vmatpush.bf16.msra.mxu2 %v496_v13  ;;  %v498_v39 = vld [vmem:[%s727_s7] sm:$0xff] }
  0x17   :  { %342 = vmatpush.bf16.msra.mxu3 %v504_v27  ;;  %v513_v40 = vld [vmem:[%s726_s6] ss:$0 sm:$0xff] }
  0x18   :  { %v514_v46 = vld [vmem:[%s728_s8] ss:$0 sm:$0xff] }
  0x19   :  { %178 = vmatpush.bf16.msra.mxu1 %v486_v7 }
  0x1a   :  { %260 = vmatpush.bf16.msra.mxu2 %v495_v14 }
  0x1b   :  { %343 = vmatpush.bf16.msra.mxu3 %v503_v28 }
  0x1d   :  { %179 = vmatpush.bf16.msra.mxu1 %v485_v8 }
  0x1e   :  { %261 = vmatpush.bf16.msra.mxu2 %v494_v15 }
  0x1f   :  { %344 = vmatpush.bf16.msra.mxu3 %v502_v29 }
  0x21   :  { %180 = vmatpush.bf16.msra.mxu1 %v484_v9 }
  0x22   :  { %262 = vmatpush.bf16.msra.mxu2 %v493_v16 }
  0x23   :  { %345 = vmatpush.bf16.msra.mxu3 %v501_v30 }
  0x25   :  { %181 = vmatpush.bf16.msra.mxu1 %v483_v10 }
  0x26   :  { %263 = vmatpush.bf16.msra.mxu2 %v492_v17 }
  0x27   :  { %346 = vmatpush.bf16.msra.mxu3 %v500_v31 }
  0x29   :  { %182 = vmatpush.bf16.msra.mxu1 %v482_v11 }
  0x2a   :  { %264 = vmatpush.bf16.msra.mxu2 %v491_v24 }
  0x2b   :  { %347 = vmatpush.bf16.msra.mxu3 %v499_v38 }
  0x2e   :  { %265 = vmatpush.bf16.msra.mxu2 %v490_v25 }
  0x2f   :  { %348 = vmatpush.bf16.msra.mxu3 %v498_v39 }
  0x91   :  { %v101_v19 = vpop.f32.mrf.mxu0 }
  0x92   :  { %v102_v20 = vadd.f32 %v511_v18, %v101_v19 }
  0x94   :  { %v105_v21 = vmax.f32 %v102_v20, 0.0 }
  0x96   :  { %v106_v22 = vpack.c.bf16 %v105_v21, %v105_v21 }
  0x98   :  { %183 = vmatmul.bf16.vlgmr.msra.gmra.mxu1 %v106_v22 }
  0x99   :  { %v103_v23 = vpop.f32.mrf.mxu0 }
 0x115   :  { %v184_v33 = vpop.f32.mrf.mxu1 }
 0x116   :  { %v185_v34 = vadd.f32 %v512_v32, %v184_v33 }
 0x118   :  { %v188_v35 = vmax.f32 %v185_v34, 0.0 }
 0x11a   :  { %v189_v36 = vpack.c.bf16 %v188_v35, %v188_v35 }
 0x11c   :  { %266 = vmatmul.bf16.vlgmr.msra.gmra.mxu2 %v189_v36 }
 0x11d   :  { %v186_v37 = vpop.f32.mrf.mxu1 }
 0x19f   :  { %v267_v41 = vpop.f32.mrf.mxu2 }
 0x1a0   :  { %v268_v42 = vadd.f32 %v513_v40, %v267_v41 }
 0x1a2   :  { %v271_v43 = vmax.f32 %v268_v42, 0.0 }
 0x1a4   :  { %v272_v44 = vpack.c.bf16 %v271_v43, %v271_v43 }
 0x1a6   :  { %349 = vmatmul.bf16.vlgmr.msra.gmra.mxu3 %v272_v44 }
 0x1a7   :  { %v269_v45 = vpop.f32.mrf.mxu2 }
 0x229   :  { %v350_v47 = vpop.f32.mrf.mxu3 }
 0x22a   :  { %v351_v48 = vadd.f32 %v514_v46, %v350_v47 }
 0x22c   :  { %v354_v49 = vmax.f32 %v351_v48, 0.0 }
 0x22e   :  { %356 = vst.msk [vmem:[#allocation7] sm:$0xff] %vm355_vm1, %v354_v49 }
 0x22f   :  { %367 = dma.vmem_to_hbm [thread:$0]  %s363_s13, 128, %s365_s15, [#allocation4]  }
 0x231   :  { %v352_v50 = vpop.f32.mrf.mxu3 }
 0x232   :  { %591 = dma.done.wait [#allocation4], 128  }
 0x233   :  { %592 = vsyncadd [#allocation4], 4294967168 }
 0x234   :  { %372 = vsyncpa [#allocation3], 1 }
 0x235   :  { %373 = vsyncpa [#allocation6], 1 }
 0x236   :  { %374 = vsyncpa [#allocation4], 1 }

</bundles_post_ra>
